<compile_context>
chip_gen: v6e
topology: v6e:2x2x1
jax: 0.10.0
libtpu: 0.0.40
codegen_flags: <defaults>
</compile_context>

<pallas_src>
import jax
import jax.numpy as jnp
from jax.experimental import pallas as pl
from jax.experimental.pallas import tpu as pltpu
from typing import NamedTuple


def _round_up(x, m):
    return ((x + m - 1) // m) * m


class FFNParams(NamedTuple):
    """Pre-transposed, pre-padded FFN parameters (lay out once at init)."""
    w1: jax.Array  # (D_pad, D_pad), (in, out) layout
    b1: jax.Array  # (1, D_pad)
    w2: jax.Array  # (D_pad, D_pad), (in, out) layout
    b2: jax.Array  # (1, D_pad)


def prepare_ffn_params(w1, b1, w2, b2, *, param_dtype=None):
    """One-time prep: transpose PyTorch (out, in) weights to (in, out) and
    zero-pad the feature dim to a multiple of 128.  Zero-padding a Linear is
    exact: padded hidden features are relu(0)=0 and feed zero columns."""
    d = w1.shape[0]
    d_pad = max(128, _round_up(d, 128))
    pad = d_pad - d
    w1t = jnp.pad(jnp.asarray(w1).T, ((0, pad), (0, pad)))
    w2t = jnp.pad(jnp.asarray(w2).T, ((0, pad), (0, pad)))
    b1p = jnp.pad(jnp.asarray(b1), (0, pad)).reshape(1, d_pad)
    b2p = jnp.pad(jnp.asarray(b2), (0, pad)).reshape(1, d_pad)
    if param_dtype is not None:  # optional bf16 cast (numerics decision)
        w1t, w2t = w1t.astype(param_dtype), w2t.astype(param_dtype)
    return FFNParams(w1t, b1p, w2t, b2p)


def _resident_spec(block_shape, index_map):
    """Constant-index operand: request a single VMEM buffer (no point
    double-buffering something that is fetched once and stays resident)."""
    try:
        return pl.BlockSpec(block_shape, index_map, pipeline_mode=pl.Buffered(1))
    except Exception:  # older jax without pipeline_mode: fall back gracefully
        return pl.BlockSpec(block_shape, index_map)


# ----------------------------- kernels ---------------------------------------

def _ffn_resident_kernel(x_ref, w1_ref, b1_ref, w2_ref, b2_ref, o_ref):
    # x_ref: (TM, D) row tile; weights (D, D) in (in, out) layout -> canonical
    # contraction, no in-kernel transpose.
    x = x_ref[...]
    h = jnp.dot(x, w1_ref[...], preferred_element_type=jnp.float32)
    h = jnp.maximum(h + b1_ref[...].astype(jnp.float32), 0.0)   # fused bias+ReLU
    y = jnp.dot(h.astype(x.dtype), w2_ref[...], preferred_element_type=jnp.float32)
    o_ref[...] = (y + b2_ref[...].astype(jnp.float32)).astype(o_ref.dtype)


def _ffn_hidden_tiled_kernel(x_ref, w1_ref, b1_ref, w2_ref, b2_ref, o_ref, acc_ref):
    # Hidden dim tiled over grid axis 1 ("arbitrary"); f32 accumulator scratch.
    k = pl.program_id(1)

    @pl.when(k == 0)
    def _():
        acc_ref[...] = jnp.zeros_like(acc_ref)

    x = x_ref[...]
    h = jnp.dot(x, w1_ref[...], preferred_element_type=jnp.float32)  # (TM, TK)
    h = jnp.maximum(h + b1_ref[...].astype(jnp.float32), 0.0)
    acc_ref[...] += jnp.dot(h.astype(x.dtype), w2_ref[...],
                            preferred_element_type=jnp.float32)

    @pl.when(k == pl.num_programs(1) - 1)
    def _():
        o_ref[...] = (acc_ref[...] + b2_ref[...].astype(jnp.float32)).astype(o_ref.dtype)


# ----------------------------- wrapper ----------------------------------------

def feed_forward_block(x, params: FFNParams, *, force_hidden_block=None):
    """x: (..., dim_ff); params from prepare_ffn_params. Returns same shape/dtype."""
    orig_shape = x.shape
    orig_dtype = x.dtype
    d = orig_shape[-1]
    d_pad = params.w1.shape[0]

    x2 = x.reshape(-1, d)
    m = x2.shape[0]
    if d_pad != d:
        x2 = jnp.pad(x2, ((0, 0), (0, d_pad - d)))

    x_item = jnp.dtype(orig_dtype).itemsize
    w_item = jnp.dtype(params.w1.dtype).itemsize

    # Generation-aware VMEM ceiling (64 MiB v7x, 128 MiB v5e/v6e) with headroom.
    try:
        vmem_cap = int(pltpu.get_tpu_info().vmem_capacity_bytes)
    except Exception:
        vmem_cap = 64 << 20
    vmem_budget = vmem_cap - (6 << 20)

    sub = max(8, 32 // x_item)                 # 8 f32 / 16 bf16 / 32 int8|fp8
    m_sub = _round_up(max(m, 1), sub)

    # Resident weights, single-buffered (constant index_map + Buffered(1)).
    resident_w_bytes = 2 * d_pad * d_pad * w_item + 2 * d_pad * w_item
    # Per-row VMEM: double-buffered in/out activation rows + f32 hidden row.
    per_row = 2 * 2 * d_pad * x_item + d_pad * 4

    use_tiled = force_hidden_block is not None
    if not use_tiled:
        tm_cap = (vmem_budget - resident_w_bytes) // per_row
        if tm_cap < sub:
            use_tiled = True      # weights don't fit resident -> tile hidden dim

    if not use_tiled:
        # ---------------- resident-weights fast path ----------------
        tm = max(sub, min(1024, m_sub, (tm_cap // sub) * sub))
        # Prefer >=2 grid steps on moderate row counts so "parallel" can shard
        # across v7x's two TensorCores (harmless on 1-TC chips).
        if m_sub >= max(256, 2 * sub) and m_sub <= tm:
            tm = _round_up(-(-m_sub // 2), sub)
        m_pad = _round_up(m, tm)
        grid = (m_pad // tm,)
        in_specs = [
            pl.BlockSpec((tm, d_pad), lambda i: (i, 0)),          # x row tile
            _resident_spec((d_pad, d_pad), lambda i: (0, 0)),     # W1 resident
            _resident_spec((1, d_pad), lambda i: (0, 0)),         # b1 resident
            _resident_spec((d_pad, d_pad), lambda i: (0, 0)),     # W2 resident
            _resident_spec((1, d_pad), lambda i: (0, 0)),         # b2 resident
        ]
        out_specs = pl.BlockSpec((tm, d_pad), lambda i: (i, 0))
        scratch = []
        kernel = _ffn_resident_kernel
        dims = ("parallel",)
        est_bytes = resident_w_bytes + tm * per_row + (2 << 20)
    else:
        # ---------------- hidden-dim tiled fallback (large D) ----------------
        tk = force_hidden_block if force_hidden_block is not None else 512
        tk = min(d_pad, max(128, _round_up(tk, 128)))
        while d_pad % tk != 0:        # keep blocks evenly dividing D_pad
            tk -= 128
        k_bytes = 2 * (2 * d_pad * tk + tk) * w_item + d_pad * w_item
        per_row_t = 2 * 2 * d_pad * x_item + d_pad * 4 + tk * 4
        tm_cap = (vmem_budget - k_bytes) // per_row_t
        tm = max(sub, min(512, m_sub, (tm_cap // sub) * sub))
        m_pad = _round_up(m, tm)
        grid = (m_pad // tm, d_pad // tk)
        in_specs = [
            pl.BlockSpec((tm, d_pad), lambda i, k: (i, 0)),       # x row tile
            pl.BlockSpec((d_pad, tk), lambda i, k: (0, k)),       # W1 column slab
            pl.BlockSpec((1, tk), lambda i, k: (0, k)),           # b1 slab
            pl.BlockSpec((tk, d_pad), lambda i, k: (k, 0)),       # W2 row slab
            _resident_spec((1, d_pad), lambda i, k: (0, 0)),      # b2 resident
        ]
        out_specs = pl.BlockSpec((tm, d_pad), lambda i, k: (i, 0))
        scratch = [pltpu.VMEM((tm, d_pad), jnp.float32)]
        kernel = _ffn_hidden_tiled_kernel
        dims = ("parallel", "arbitrary")
        est_bytes = k_bytes + tm * per_row_t + (2 << 20)

    if m_pad != m:
        x2 = jnp.pad(x2, ((0, m_pad - m), (0, 0)))

    vmem_limit = int(min(max(est_bytes, 16 << 20), vmem_cap - (2 << 20)))

    cost = pl.CostEstimate(
        flops=4 * m_pad * d_pad * d_pad,
        transcendentals=0,
        bytes_accessed=(2 * m_pad * d_pad * x_item
                        + (2 * d_pad * d_pad + 2 * d_pad) * w_item))

    out = pl.pallas_call(
        kernel,
        out_shape=jax.ShapeDtypeStruct((m_pad, d_pad), orig_dtype),
        grid_spec=pltpu.PrefetchScalarGridSpec(
            num_scalar_prefetch=0,
            grid=grid,
            in_specs=in_specs,
            out_specs=out_specs,
            scratch_shapes=scratch),
        compiler_params=pltpu.CompilerParams(
            dimension_semantics=dims,
            vmem_limit_bytes=vmem_limit),
        cost_estimate=cost,
    )(x2, params.w1, params.b1, params.w2, params.b2)

    return out[:m, :d].reshape(orig_shape)


# ----------------------------- reference + demo -------------------------------

def _ref_ffn(x, w1, b1, w2, b2):
    return jnp.maximum(x @ w1.T + b1, 0.0) @ w2.T + b2


def _rand_params(key, d):
    bound = 1.0 / (d ** 0.5)
    kw1, kb1, kw2, kb2 = jax.random.split(key, 4)
    w1 = jax.random.uniform(kw1, (d, d), jnp.float32, -bound, bound)
    b1 = jax.random.uniform(kb1, (d,), jnp.float32, -bound, bound)
    w2 = jax.random.uniform(kw2, (d, d), jnp.float32, -bound, bound)
    b2 = jax.random.uniform(kb2, (d,), jnp.float32, -bound, bound)
    return w1, b1, w2, b2


if __name__ == "__main__":
    key = jax.random.PRNGKey(0)
    k1, k2, k3, kx1, kx2, kx3 = jax.random.split(key, 6)

    # --- Case 1: module's native tiny regime (batch=2, seq=8, dim_ff=32) -----
    batch, seq, dim_ff = 2, 8, 32
    w1, b1, w2, b2 = _rand_params(k1, dim_ff)
    params = prepare_ffn_params(w1, b1, w2, b2)          # one-time prep
    x = jax.random.normal(kx1, (batch, seq, dim_ff), dtype=jnp.float32)
    out = jax.block_until_ready(feed_forward_block(x, params))
    ref = _ref_ffn(x, w1, b1, w2, b2)
    assert out.shape == x.shape
    assert jnp.allclose(out, ref, atol=1e-5, rtol=1e-5)

    # --- Case 2: multi-tile row grid (M=640 -> two "parallel" steps) ---------
    b2_, s2_, d2_ = 4, 160, 128
    w1b, b1b, w2b, b2b = _rand_params(k2, d2_)
    params2 = prepare_ffn_params(w1b, b1b, w2b, b2b)
    x2 = jax.random.normal(kx2, (b2_, s2_, d2_), dtype=jnp.float32)
    out2 = jax.block_until_ready(feed_forward_block(x2, params2))
    ref2 = _ref_ffn(x2, w1b, b1b, w2b, b2b)
    assert out2.shape == x2.shape
    assert jnp.allclose(out2, ref2, atol=1e-4, rtol=1e-4)

    # --- Case 3: hidden-dim tiled fallback (forced small block to exercise) --
    b3_, s3_, d3_ = 2, 64, 256
    w1c, b1c, w2c, b2c = _rand_params(k3, d3_)
    params3 = prepare_ffn_params(w1c, b1c, w2c, b2c)
    x3 = jax.random.normal(kx3, (b3_, s3_, d3_), dtype=jnp.float32)
    out3 = jax.block_until_ready(feed_forward_block(x3, params3,
                                                    force_hidden_block=128))
    ref3 = _ref_ffn(x3, w1c, b1c, w2c, b2c)
    assert out3.shape == x3.shape
    assert jnp.allclose(out3, ref3, atol=1e-4, rtol=1e-4)

    print("KERNEL_OK")
</pallas_src>

<mosaic_0001>
module attributes {stable_mosaic.version = 11 : i64} {
  func.func @_ffn_resident_kernel(%arg0: i32, %arg1: memref<16x128xf32, #tpu.memory_space<vmem>>, %arg2: memref<128x128xf32, #tpu.memory_space<vmem>>, %arg3: memref<1x128xf32, #tpu.memory_space<vmem>>, %arg4: memref<128x128xf32, #tpu.memory_space<vmem>>, %arg5: memref<1x128xf32, #tpu.memory_space<vmem>>, %arg6: memref<16x128xf32, #tpu.memory_space<vmem>>) attributes {dimension_semantics = [#tpu.dimension_semantics<parallel>], iteration_bounds = array<i64: 1>, scalar_prefetch = 0 : i64, scratch_operands = 0 : i64, tpu.core_type = #tpu.core_type<tc>, window_params = [{transform_indices = @transform_0, window_bounds = array<i64: 16, 128>}, {pipeline_mode = #tpu.pipeline_mode<synchronous>, transform_indices = @transform_1, window_bounds = array<i64: 128, 128>}, {pipeline_mode = #tpu.pipeline_mode<synchronous>, transform_indices = @transform_2, window_bounds = array<i64: 1, 128>}, {pipeline_mode = #tpu.pipeline_mode<synchronous>, transform_indices = @transform_3, window_bounds = array<i64: 128, 128>}, {pipeline_mode = #tpu.pipeline_mode<synchronous>, transform_indices = @transform_4, window_bounds = array<i64: 1, 128>}, {transform_indices = @transform_5, window_bounds = array<i64: 16, 128>}]} {
    %c0 = arith.constant 0 : index
    %c0_0 = arith.constant 0 : index
    %0 = vector.load %arg1[%c0, %c0_0] : memref<16x128xf32, #tpu.memory_space<vmem>>, vector<16x128xf32>
    %c0_1 = arith.constant 0 : index
    %c0_2 = arith.constant 0 : index
    %1 = vector.load %arg2[%c0_1, %c0_2] : memref<128x128xf32, #tpu.memory_space<vmem>>, vector<128x128xf32>
    %cst = arith.constant dense<0.000000e+00> : vector<16x128xf32>
    %2 = tpu.matmul %0, %1, %cst {dimension_numbers = #tpu.dot_dimension_numbers<[1], [0], [0], [1], [0, 0, 1, 1], [], []>} : vector<16x128xf32>, vector<128x128xf32>, vector<16x128xf32> -> vector<16x128xf32>
    %c0_3 = arith.constant 0 : index
    %c0_4 = arith.constant 0 : index
    %3 = vector.load %arg3[%c0_3, %c0_4] : memref<1x128xf32, #tpu.memory_space<vmem>>, vector<1x128xf32>
    %4 = vector.broadcast %3 : vector<1x128xf32> to vector<16x128xf32>
    %5 = arith.addf %2, %4 : vector<16x128xf32>
    %cst_5 = arith.constant 0.000000e+00 : f32
    %6 = vector.broadcast %cst_5 : f32 to vector<16x128xf32>
    %7 = arith.maximumf %5, %6 : vector<16x128xf32>
    %c0_6 = arith.constant 0 : index
    %c0_7 = arith.constant 0 : index
    %8 = vector.load %arg4[%c0_6, %c0_7] : memref<128x128xf32, #tpu.memory_space<vmem>>, vector<128x128xf32>
    %cst_8 = arith.constant dense<0.000000e+00> : vector<16x128xf32>
    %9 = tpu.matmul %7, %8, %cst_8 {dimension_numbers = #tpu.dot_dimension_numbers<[1], [0], [0], [1], [0, 0, 1, 1], [], []>} : vector<16x128xf32>, vector<128x128xf32>, vector<16x128xf32> -> vector<16x128xf32>
    %c0_9 = arith.constant 0 : index
    %c0_10 = arith.constant 0 : index
    %10 = vector.load %arg5[%c0_9, %c0_10] : memref<1x128xf32, #tpu.memory_space<vmem>>, vector<1x128xf32>
    %11 = vector.broadcast %10 : vector<1x128xf32> to vector<16x128xf32>
    %12 = arith.addf %9, %11 : vector<16x128xf32>
    %c0_11 = arith.constant 0 : index
    %c0_12 = arith.constant 0 : index
    %13 = vector.load %arg6[%c0_11, %c0_12] : memref<16x128xf32, #tpu.memory_space<vmem>>, vector<16x128xf32>
    tpu.vector_store %arg6[%c0_11, %c0_12], %12 {strides = array<i32>} : memref<16x128xf32, #tpu.memory_space<vmem>>, vector<16x128xf32>,
    return
  }
  func.func @transform_0(%arg0: i32) -> (i32, i32) {
    %c0_i32 = arith.constant 0 : i32
    %c0_i32_0 = arith.constant 0 : i32
    return %arg0, %c0_i32 : i32, i32
  }
  func.func @transform_1(%arg0: i32) -> (i32, i32) {
    %c0_i32 = arith.constant 0 : i32
    %c0_i32_0 = arith.constant 0 : i32
    %c0_i32_1 = arith.constant 0 : i32
    return %c0_i32, %c0_i32_0 : i32, i32
  }
  func.func @transform_2(%arg0: i32) -> (i32, i32) {
    %c0_i32 = arith.constant 0 : i32
    %c0_i32_0 = arith.constant 0 : i32
    %c0_i32_1 = arith.constant 0 : i32
    return %c0_i32, %c0_i32_0 : i32, i32
  }
  func.func @transform_3(%arg0: i32) -> (i32, i32) {
    %c0_i32 = arith.constant 0 : i32
    %c0_i32_0 = arith.constant 0 : i32
    %c0_i32_1 = arith.constant 0 : i32
    return %c0_i32, %c0_i32_0 : i32, i32
  }
  func.func @transform_4(%arg0: i32) -> (i32, i32) {
    %c0_i32 = arith.constant 0 : i32
    %c0_i32_0 = arith.constant 0 : i32
    %c0_i32_1 = arith.constant 0 : i32
    return %c0_i32, %c0_i32_0 : i32, i32
  }
  func.func @transform_5(%arg0: i32) -> (i32, i32) {
    %c0_i32 = arith.constant 0 : i32
    %c0_i32_0 = arith.constant 0 : i32
    return %arg0, %c0_i32 : i32, i32
  }
}

</mosaic_0001>

<bundles_post_ra>
// kernel: tpu_custom_call.1
= control target key start
LH: loop header
LB: loop body
LE: loop exit
PB: predicated region body
PF: predicated region fallthrough
CT: control target
= control target key end

     0   :  { %10 = vsyncpa [#allocation3], 0  ;;  %s548_s0 = inlined_call_operand.hbm [shape: f32[16,128], index: 0, kind: input, shape index: {}]   ;;  %s549_s1 = inlined_call_operand.hbm [shape: f32[128,128], index: 1, kind: input, shape index: {}]   ;;  %s550_s2 = inlined_call_operand.vmem [shape: f32[1,128], index: 2, kind: input, shape index: {}]   ;;  %s551_s3 = inlined_call_operand.hbm [shape: f32[128,128], index: 3, kind: input, shape index: {}]   ;;  %s552_s4 = inlined_call_operand.vmem [shape: f32[1,128], index: 4, kind: input, shape index: {}]   ;;  %s553_s5 = inlined_call_operand.hbm [shape: f32[16,128], index: 5, kind: output, shape index: {}]  }
   0x1   :  { %11 = vsyncpa [#allocation6], 0 }
   0x2   :  { %12 = vsyncpa [#allocation4], 0  ;;  %s482_s18 = smov [#allocation5]   ;;  %s483_s20 = smov [#allocation2]  }
   0x3   :  { %s30_s19 = sshll.u32 %s482_s18, 4  ;;  %s18_s21 = sshll.u32 %s483_s20, 4  ;;  %s31_s19 = int_to_ptr.vmem [resolvable:$true] %s30_s19  ;;  %s19_s21 = int_to_ptr.vmem [resolvable:$true] %s18_s21 }
   0x4   :  { %s404_s22 = scalar_lea.vmem %s31_s19, 2048  ;;  %p409_p1 = scmp.lt.s32.totalorder %s31_s19, %s31_s19 }
   0x5   :  { %p405_p0 = scmp.ne.s32.totalorder %s31_s19, %s404_s22  ;;  %p410_p2 = scmp.lt.s32.totalorder %s404_s22, %s404_s22 }
   0x7   :  { %p411_p3 = por %p410_p2, %p409_p1 }
   0x9   :  { %p412_p4 = pnand %p411_p3, %p405_p0 }
   0xb   :  { %415 = shalt.err (!%p412_p4)
}
   0xc   :  { %s484_s23 = smov 128   ;;  %s485_s24 = smov 8  }
   0xd   :  { %36 = dma.hbm_to_vmem [thread:$0]  %s549_s1, 2048, %s31_s19, [#allocation6], %s484_s23, %s484_s23, %s485_s24  }
   0xe   :  { %s424_s27 = scalar_lea.vmem %s19_s21, 256  ;;  %p429_p6 = scmp.lt.s32.totalorder %s19_s21, %s19_s21 }
   0xf   :  { %p425_p5 = scmp.ne.s32.totalorder %s19_s21, %s424_s27  ;;  %p430_p7 = scmp.lt.s32.totalorder %s424_s27, %s424_s27 }
  0x11   :  { %p431_p8 = por %p430_p7, %p429_p6 }
  0x13   :  { %p432_p9 = pnand %p431_p8, %p425_p5 }
  0x15   :  { %435 = shalt.err (!%p432_p9)
}
  0x16   :  { %24 = dma.hbm_to_vmem [thread:$0]  %s548_s0, 256, %s19_s21, [#allocation3], %s484_s23, %s484_s23, %s485_s24  }
  0x17   :  { %s486_s30 = smov [#allocation7]  }
  0x18   :  { %s44_s6 = sshll.u32 %s486_s30, 4  ;;  %s45_s6 = int_to_ptr.vmem [resolvable:$true] %s44_s6 }
  0x19   :  { %s444_s7 = scalar_lea.vmem %s45_s6, 2048  ;;  %p449_p11 = scmp.lt.s32.totalorder %s45_s6, %s45_s6 }
  0x1a   :  { %p445_p10 = scmp.ne.s32.totalorder %s45_s6, %s444_s7  ;;  %p450_p12 = scmp.lt.s32.totalorder %s444_s7, %s444_s7 }
  0x1c   :  { %p451_p13 = por %p450_p12, %p449_p11 }
  0x1e   :  { %p452_p0 = pnand %p451_p13, %p445_p10 }
  0x20   :  { %455 = shalt.err (!%p452_p0)
}
  0x21   :  { %50 = dma.hbm_to_vmem [thread:$0]  %s551_s3, 2048, %s45_s6, [#allocation6], %s484_s23, %s484_s23, %s485_s24  }
  0x22   :  { %476 = dma.done.wait [#allocation3], 256  }
  0x23   :  { %477 = vsyncadd [#allocation3], 4294967040 }
  0x24   :  { %478 = dma.done.wait [#allocation6], 4096  }
  0x25   :  { %479 = vsyncadd [#allocation6], 4294963200  ;;  %v79_v0 = vld [vmem:[#allocation5 + $0x78] sm:$0xff]  ;;  %v78_v1 = vld [vmem:[#allocation5 + $0x70] sm:$0xff]  ;;  %s487_s11 = smov [#allocation8]  }
  0x26   :  { %320 = vmatprep.subr.mxu0 %v79_v0  ;;  %v77_v2 = vld [vmem:[#allocation5 + $0x68] sm:$0xff]  ;;  %v76_v3 = vld [vmem:[#allocation5 + $0x60] sm:$0xff]  ;;  %v62_v4 = vld [vmem:[#allocation2] sm:$0xff]  ;;  %s269_s12 = sshll.u32 %s487_s11, 4  ;;  %s270_s12 = int_to_ptr.vmem [resolvable:$true] %s269_s12 }
  0x27   :  { %321 = vmatpush3.msra.mxu0 %v79_v0  ;;  %v75_v5 = vld [vmem:[#allocation5 + $0x58] sm:$0xff]  ;;  %352 = vmatprep.mubr.f32.mxu0 %v62_v4  ;;  %v178_v7 = vld [vmem:[#allocation7 + $0x70] sm:$0xff]  ;;  %v177_v9 = vld [vmem:[#allocation7 + $0x68] sm:$0xff]  ;;  %p461_p2 = scmp.lt.s32.totalorder %s270_s12, %s270_s12 }
  0x28   :  { %322 = vmatprep.subr.mxu0 %v78_v1  ;;  %v179_v6 = vld [vmem:[#allocation7 + $0x78] sm:$0xff]  ;;  %v74_v8 = vld [vmem:[#allocation5 + $0x50] sm:$0xff]  ;;  %v73_v10 = vld [vmem:[#allocation5 + $0x48] sm:$0xff] }
  0x29   :  { %323 = vmatpush3.msra.mxu0 %v78_v1  ;;  %355 = vmatprep.subr.mxu1 %v179_v6  ;;  %v176_v11 = vld [vmem:[#allocation7 + $0x60] sm:$0xff]  ;;  %v175_v13 = vld [vmem:[#allocation7 + $0x58] sm:$0xff]  ;;  %v174_v15 = vld [vmem:[#allocation7 + $0x50] sm:$0xff] }
  0x2a   :  { %324 = vmatprep.subr.mxu0 %v77_v2  ;;  %356 = vmatpush3.msra.mxu1 %v179_v6  ;;  %v72_v12 = vld [vmem:[#allocation5 + $0x40] sm:$0xff]  ;;  %v71_v14 = vld [vmem:[#allocation5 + $0x38] sm:$0xff]  ;;  %v70_v16 = vld [vmem:[#allocation5 + $0x30] sm:$0xff] }
  0x2b   :  { %325 = vmatpush3.msra.mxu0 %v77_v2  ;;  %357 = vmatprep.subr.mxu1 %v178_v7  ;;  %v173_v17 = vld [vmem:[#allocation7 + $0x48] sm:$0xff]  ;;  %v172_v19 = vld [vmem:[#allocation7 + $0x40] sm:$0xff]  ;;  %v171_v21 = vld [vmem:[#allocation7 + $0x38] sm:$0xff] }
  0x2c   :  { %326 = vmatprep.subr.mxu0 %v76_v3  ;;  %358 = vmatpush3.msra.mxu1 %v178_v7  ;;  %v69_v18 = vld [vmem:[#allocation5 + $0x28] sm:$0xff]  ;;  %v68_v20 = vld [vmem:[#allocation5 + $0x20] sm:$0xff]  ;;  %v67_v22 = vld [vmem:[#allocation5 + $0x18] sm:$0xff] }
  0x2d   :  { %327 = vmatpush3.msra.mxu0 %v76_v3  ;;  %359 = vmatprep.subr.mxu1 %v177_v9  ;;  %v170_v23 = vld [vmem:[#allocation7 + $0x30] sm:$0xff]  ;;  %v169_v25 = vld [vmem:[#allocation7 + $0x28] sm:$0xff]  ;;  %v168_v27 = vld [vmem:[#allocation7 + $0x20] sm:$0xff] }
  0x2e   :  { %328 = vmatprep.subr.mxu0 %v75_v5  ;;  %360 = vmatpush3.msra.mxu1 %v177_v9  ;;  %v66_v24 = vld [vmem:[#allocation5 + $0x10] sm:$0xff]  ;;  %v65_v26 = vld [vmem:[#allocation5 + $0x8] sm:$0xff]  ;;  %v64_v28 = vld [vmem:[#allocation5] sm:$0xff] }
  0x2f   :  { %329 = vmatpush3.msra.mxu0 %v75_v5  ;;  %361 = vmatprep.subr.mxu1 %v176_v11  ;;  %v63_v29 = vld [vmem:[#allocation2 + $0x8] sm:$0xff]  ;;  %v166_v31 = vld [vmem:[#allocation7 + $0x10] sm:$0xff]  ;;  %v165_v32 = vld [vmem:[#allocation7 + $0x8] sm:$0xff] }
  0x30   :  { %330 = vmatprep.subr.mxu0 %v74_v8  ;;  %362 = vmatpush3.msra.mxu1 %v176_v11  ;;  %v167_v30 = vld [vmem:[#allocation7 + $0x18] sm:$0xff]  ;;  %v164_v33 = vld [vmem:[#allocation7] sm:$0xff]  ;;  %v282_v34 = vld [vmem:[%s550_s2] ss:$0 sm:$0xff]  ;;  %s456_s2 = scalar_lea.vmem %s270_s12, 256 }
  0x31   :  { %331 = vmatpush3.msra.mxu0 %v74_v8  ;;  %363 = vmatprep.subr.mxu1 %v175_v13  ;;  %v283_v41 = vld [vmem:[%s552_s4] ss:$0 sm:$0xff]  ;;  %p457_p1 = scmp.ne.s32.totalorder %s270_s12, %s456_s2  ;;  %p462_p3 = scmp.lt.s32.totalorder %s456_s2, %s456_s2 }
  0x32   :  { %332 = vmatprep.subr.mxu0 %v73_v10  ;;  %364 = vmatpush3.msra.mxu1 %v175_v13 }
  0x33   :  { %333 = vmatpush3.msra.mxu0 %v73_v10  ;;  %365 = vmatprep.subr.mxu1 %v174_v15  ;;  %p463_p4 = por %p462_p3, %p461_p2 }
  0x34   :  { %334 = vmatprep.subr.mxu0 %v72_v12  ;;  %366 = vmatpush3.msra.mxu1 %v174_v15 }
  0x35   :  { %335 = vmatpush3.msra.mxu0 %v72_v12  ;;  %367 = vmatprep.subr.mxu1 %v173_v17  ;;  %p464_p5 = pnand %p463_p4, %p457_p1 }
  0x36   :  { %336 = vmatprep.subr.mxu0 %v71_v14  ;;  %368 = vmatpush3.msra.mxu1 %v173_v17 }
  0x37   :  { %337 = vmatpush3.msra.mxu0 %v71_v14  ;;  %369 = vmatprep.subr.mxu1 %v172_v19 }
  0x38   :  { %338 = vmatprep.subr.mxu0 %v70_v16  ;;  %370 = vmatpush3.msra.mxu1 %v172_v19 }
  0x39   :  { %339 = vmatpush3.msra.mxu0 %v70_v16  ;;  %371 = vmatprep.subr.mxu1 %v171_v21 }
  0x3a   :  { %340 = vmatprep.subr.mxu0 %v69_v18  ;;  %372 = vmatpush3.msra.mxu1 %v171_v21 }
  0x3b   :  { %341 = vmatpush3.msra.mxu0 %v69_v18  ;;  %373 = vmatprep.subr.mxu1 %v170_v23 }
  0x3c   :  { %342 = vmatprep.subr.mxu0 %v68_v20  ;;  %374 = vmatpush3.msra.mxu1 %v170_v23 }
  0x3d   :  { %343 = vmatpush3.msra.mxu0 %v68_v20  ;;  %375 = vmatprep.subr.mxu1 %v169_v25 }
  0x3e   :  { %344 = vmatprep.subr.mxu0 %v67_v22  ;;  %376 = vmatpush3.msra.mxu1 %v169_v25 }
  0x3f   :  { %345 = vmatpush3.msra.mxu0 %v67_v22  ;;  %377 = vmatprep.subr.mxu1 %v168_v27 }
  0x40   :  { %346 = vmatprep.subr.mxu0 %v66_v24  ;;  %378 = vmatpush3.msra.mxu1 %v168_v27 }
  0x41   :  { %347 = vmatpush3.msra.mxu0 %v66_v24  ;;  %379 = vmatprep.subr.mxu1 %v167_v30 }
  0x42   :  { %348 = vmatprep.subr.mxu0 %v65_v26  ;;  %380 = vmatpush3.msra.mxu1 %v167_v30 }
  0x43   :  { %349 = vmatpush3.msra.mxu0 %v65_v26  ;;  %381 = vmatprep.subr.mxu1 %v166_v31 }
  0x44   :  { %350 = vmatprep.subr.mxu0 %v64_v28  ;;  %382 = vmatpush3.msra.mxu1 %v166_v31 }
  0x45   :  { %351 = vmatpush3.msra.mxu0 %v64_v28  ;;  %383 = vmatprep.subr.mxu1 %v165_v32 }
  0x46   :  { %353 = vmatmul.mubr.f32.vlgmr.msra.gmra.mxu0 %v63_v29  ;;  %384 = vmatpush3.msra.mxu1 %v165_v32 }
  0x47   :  { %385 = vmatprep.subr.mxu1 %v164_v33 }
  0x48   :  { %386 = vmatpush3.msra.mxu1 %v164_v33 }
 0x106   :  { %v354_v35 = vpop.f32.mrf.mxu0 }
 0x107   :  { %v159_v36 = vadd.f32 %v354_v35, %v282_v34 }
 0x108   :  { %v153_v37 = vpop.f32.mrf.mxu0 }
 0x109   :  { %v154_v38 = vadd.f32 %v282_v34, %v153_v37  ;;  %v163_v40 = vmax.f32 %v159_v36, 0.0 }
 0x10b   :  { %v162_v39 = vmax.f32 %v154_v38, 0.0 }
 0x10d   :  { %387 = vmatprep.mubr.f32.mxu1 %v162_v39 }
 0x10e   :  { %388 = vmatmul.mubr.f32.vlgmr.msra.gmra.mxu1 %v163_v40 }
 0x1ce   :  { %v389_v42 = vpop.f32.mrf.mxu1 }
 0x1cf   :  { %v259_v43 = vadd.f32 %v389_v42, %v283_v41 }
 0x1d0   :  { %v253_v44 = vpop.f32.mrf.mxu1 }
 0x1d1   :  { %263 = vst [vmem:[#allocation8 + $0x8] sm:$0xff] %v259_v43  ;;  %v254_v45 = vadd.f32 %v283_v41, %v253_v44 }
 0x1d3   :  { %262 = vst [vmem:[#allocation8] sm:$0xff] %v254_v45 }
 0x1d4   :  { %467 = shalt.err (!%p464_p5)
}
 0x1d5   :  { %275 = dma.vmem_to_hbm [thread:$0]  %s270_s12, 256, %s553_s5, [#allocation4], %s484_s23, %s484_s23, %s485_s24  }
 0x1d6   :  { %480 = dma.done.wait [#allocation4], 256  }
 0x1d7   :  { %481 = vsyncadd [#allocation4], 4294967040 }
 0x1d8   :  { %279 = vsyncpa [#allocation3], 1 }
 0x1d9   :  { %280 = vsyncpa [#allocation6], 1 }
 0x1da   :  { %281 = vsyncpa [#allocation4], 1 }

</bundles_post_ra>
